<compile_context>
chip_gen: v5e
topology: v5e:2x2
jax: 0.10.0
libtpu: 0.0.40
codegen_flags: <defaults>
</compile_context>

<pallas_src>
import jax
import jax.numpy as jnp
from jax import lax
from jax.experimental import pallas as pl
from jax.experimental.pallas import tpu as pltpu


def _round_up(x, m):
    return (x + m - 1) // m * m


def mlp_kernel(x_ref, w1_ref, b1_ref, w2_ref, b2_ref, w3_ref, b3_ref,
               w4r_ref, b4_ref, o_ref):
    # x arrives as f32 (single HBM read); cast to bf16 in-registers right
    # before the MXU so x is never materialized twice in HBM.
    xb = x_ref[...].astype(jnp.bfloat16)
    # fc1..fc3: bf16 MXU matmuls with f32 accumulation; bias + ReLU in f32.
    h = jnp.dot(xb, w1_ref[...], preferred_element_type=jnp.float32)
    h = jnp.maximum(h + b1_ref[...], 0.0)
    h = jnp.dot(h.astype(jnp.bfloat16), w2_ref[...],
                preferred_element_type=jnp.float32)
    h = jnp.maximum(h + b2_ref[...], 0.0)
    h = jnp.dot(h.astype(jnp.bfloat16), w3_ref[...],
                preferred_element_type=jnp.float32)
    h = jnp.maximum(h + b3_ref[...], 0.0)                 # (tile, 16) f32
    # fc4 (out_features = 1): NT matmul contracting the 16-dim of both
    # operands, so the result is a lane-dense (*, tile) row instead of a
    # (tile, 1) column (which would pad to (tile, 128) in VMEM and force
    # masked narrow stores). w4 is replicated to 8 rows in the wrapper so the
    # lhs is a full 8-row sublane group; we keep row 0.
    row = lax.dot_general(w4r_ref[...], h, (((1,), (1,)), ((), ())),
                          preferred_element_type=jnp.float32)[0:1, :]
    row = row + b4_ref[...]
    o_ref[...] = row.reshape(o_ref.shape).astype(o_ref.dtype)


def _choose_tile(B, F, max_tile):
    """Pick the batch tile: big enough to amortize per-step overhead, small
    enough to fit VMEM (v7x: 64 MiB/TC), a multiple of 128 (lane-dense out
    block / bf16 packing), and leaving >= 2 grid steps when B allows so the
    two v7x TensorCores both get work."""
    # Rough per-row VMEM bytes: x f32 double-buffered (8F) + in-kernel bf16
    # copy (2F) + h1/h2/h3 in f32+bf16 (~672) + lane-dense out block (<=64).
    per_row = 10 * F + 768
    tile = min(max_tile, (28 * 1024 * 1024) // per_row)
    tile = min(tile, _round_up(pl.cdiv(B, 2), 128))   # keep grid >= 2 when possible
    return max(128, (tile // 128) * 128)


def mlp_forward(x, params, *, max_batch_tile=16384):
    """Fused MLP forward. x: (B, F) float; returns (B, 1) float32.

    Weights are stored (in_features, out_features) (transpose of PyTorch).
    """
    (w1, b1), (w2, b2), (w3, b3), (w4, b4) = params
    B, F = x.shape
    assert w1.shape[0] == F

    # x keeps its f32 layout in HBM (cast to bf16 happens inside the kernel).
    x = x.astype(jnp.float32)
    # Weights are tiny: pre-cast fc1..fc3 to bf16; biases / fc4 stay f32.
    w1b, w2b, w3b = (w.astype(jnp.bfloat16) for w in (w1, w2, w3))
    b1, b2, b3, b4 = (b.astype(jnp.float32) for b in (b1, b2, b3, b4))
    w4r = jnp.broadcast_to(w4.astype(jnp.float32).T, (8, w4.shape[0]))  # (8, 16)

    tile = _choose_tile(B, F, max_batch_tile)
    num_tiles = pl.cdiv(B, tile)   # ragged tail handled by Pallas block clamping

    x_map = lambda i: (i, 0)
    rep2 = lambda i: (0, 0)        # constant block index -> weights DMA'd once

    in_specs = [
        pl.BlockSpec((tile, F), x_map),
        pl.BlockSpec(w1b.shape, rep2), pl.BlockSpec(b1.shape, rep2),
        pl.BlockSpec(w2b.shape, rep2), pl.BlockSpec(b2.shape, rep2),
        pl.BlockSpec(w3b.shape, rep2), pl.BlockSpec(b3.shape, rep2),
        pl.BlockSpec(w4r.shape, rep2), pl.BlockSpec(b4.shape, rep2),
    ]
    # Lane-dense output: each grid step writes one (1, 1, tile) row.
    out_specs = pl.BlockSpec((1, 1, tile), lambda i: (i, 0, 0))

    flops = 2 * B * (F * 64 + 64 * 32 + 32 * 16 + 16 * 1)
    bytes_accessed = (x.size * x.dtype.itemsize + B * 4
                      + sum(int(a.size) * a.dtype.itemsize
                            for a in (w1b, b1, w2b, b2, w3b, b3, w4r, b4)))

    out = pl.pallas_call(
        mlp_kernel,
        out_shape=jax.ShapeDtypeStruct((num_tiles, 1, tile), jnp.float32),
        grid_spec=pltpu.PrefetchScalarGridSpec(
            num_scalar_prefetch=0,
            grid=(num_tiles,),
            in_specs=in_specs,
            out_specs=out_specs,
        ),
        compiler_params=pltpu.CompilerParams(
            dimension_semantics=("parallel",),
            vmem_limit_bytes=48 * 1024 * 1024,
        ),
        cost_estimate=pl.CostEstimate(flops=flops, transcendentals=0,
                                      bytes_accessed=bytes_accessed),
    )(x, w1b, b1, w2b, b2, w3b, b3, w4r, b4)

    # (num_tiles, 1, tile) is already in flat batch order; drop the ragged
    # tail (tiny XLA slice) and present the PyTorch-shaped (B, 1) result.
    return out.reshape(-1)[:B].reshape(B, 1)


def init_params(key, input_size):
    """Deterministic init, PyTorch nn.Linear-style U(-1/sqrt(fan_in), 1/sqrt(fan_in))."""
    dims = [input_size, 64, 32, 16, 1]
    params = []
    for i in range(4):
        fan_in, fan_out = dims[i], dims[i + 1]
        key, kw, kb = jax.random.split(key, 3)
        bound = 1.0 / (fan_in ** 0.5)
        # Stored as (in, out) == transpose of PyTorch's (out, in) weight.
        w = jax.random.uniform(kw, (fan_in, fan_out), jnp.float32, -bound, bound)
        b = jax.random.uniform(kb, (1, fan_out), jnp.float32, -bound, bound)
        params.append((w, b))
    return params


def mlp_reference(x, params):
    """Pure-JAX reference applying the same bf16 casts as the kernel."""
    (w1, b1), (w2, b2), (w3, b3), (w4, b4) = params
    hi = lax.Precision.HIGHEST
    bf = lambda a: a.astype(jnp.bfloat16).astype(jnp.float32)
    h = jnp.maximum(jnp.dot(bf(x), bf(w1), precision=hi) + b1, 0.0)
    h = jnp.maximum(jnp.dot(bf(h), bf(w2), precision=hi) + b2, 0.0)
    h = jnp.maximum(jnp.dot(bf(h), bf(w3), precision=hi) + b3, 0.0)
    return jnp.dot(h, w4, precision=hi) + b4


if __name__ == "__main__":
    key = jax.random.PRNGKey(0)
    input_size = 32     # stand-in for X_train.shape[1]
    kx, kp = jax.random.split(key)
    params = init_params(kp, input_size)

    # batch=512 -> tile=256, 2 exact grid steps; batch=500 -> 2 steps with a
    # ragged last block (exercises the no-padding cdiv path).
    for batch in (512, 500):
        x = jax.random.normal(jax.random.fold_in(kx, batch),
                              (batch, input_size), jnp.float32)
        out = jax.block_until_ready(mlp_forward(x, params))
        ref = mlp_reference(x, params)
        assert out.shape == (batch, 1)
        max_err = float(jnp.max(jnp.abs(out - ref)))
        assert jnp.allclose(out, ref, atol=1e-2, rtol=1e-2), \
            f"mismatch vs reference (B={batch}): {max_err}"

    print("KERNEL_OK")
</pallas_src>

<mosaic_0001>
module attributes {stable_mosaic.version = 11 : i64} {
  func.func @mlp_kernel(%arg0: i32, %arg1: memref<256x32xf32, #tpu.memory_space<vmem>>, %arg2: memref<32x64xbf16, #tpu.memory_space<vmem>>, %arg3: memref<1x64xf32, #tpu.memory_space<vmem>>, %arg4: memref<64x32xbf16, #tpu.memory_space<vmem>>, %arg5: memref<1x32xf32, #tpu.memory_space<vmem>>, %arg6: memref<32x16xbf16, #tpu.memory_space<vmem>>, %arg7: memref<1x16xf32, #tpu.memory_space<vmem>>, %arg8: memref<8x16xf32, #tpu.memory_space<vmem>>, %arg9: memref<1x1xf32, #tpu.memory_space<vmem>>, %arg10: memref<1x1x256xf32, #tpu.memory_space<vmem>>) attributes {dimension_semantics = [#tpu.dimension_semantics<parallel>], iteration_bounds = array<i64: 2>, scalar_prefetch = 0 : i64, scratch_operands = 0 : i64, tpu.core_type = #tpu.core_type<tc>, window_params = [{transform_indices = @transform_0, window_bounds = array<i64: 256, 32>}, {pipeline_mode = #tpu.pipeline_mode<synchronous>, transform_indices = @transform_1, window_bounds = array<i64: 32, 64>}, {pipeline_mode = #tpu.pipeline_mode<synchronous>, transform_indices = @transform_2, window_bounds = array<i64: 1, 64>}, {pipeline_mode = #tpu.pipeline_mode<synchronous>, transform_indices = @transform_3, window_bounds = array<i64: 64, 32>}, {pipeline_mode = #tpu.pipeline_mode<synchronous>, transform_indices = @transform_4, window_bounds = array<i64: 1, 32>}, {pipeline_mode = #tpu.pipeline_mode<synchronous>, transform_indices = @transform_5, window_bounds = array<i64: 32, 16>}, {pipeline_mode = #tpu.pipeline_mode<synchronous>, transform_indices = @transform_6, window_bounds = array<i64: 1, 16>}, {pipeline_mode = #tpu.pipeline_mode<synchronous>, transform_indices = @transform_7, window_bounds = array<i64: 8, 16>}, {pipeline_mode = #tpu.pipeline_mode<synchronous>, transform_indices = @transform_8, window_bounds = array<i64: 1, 1>}, {transform_indices = @transform_9, window_bounds = array<i64: 1, 1, 256>}]} {
    %c0 = arith.constant 0 : index
    %c0_0 = arith.constant 0 : index
    %0 = vector.load %arg1[%c0, %c0_0] : memref<256x32xf32, #tpu.memory_space<vmem>>, vector<256x32xf32>
    %1 = arith.truncf %0 : vector<256x32xf32> to vector<256x32xbf16>
    %c0_1 = arith.constant 0 : index
    %c0_2 = arith.constant 0 : index
    %2 = vector.load %arg2[%c0_1, %c0_2] : memref<32x64xbf16, #tpu.memory_space<vmem>>, vector<32x64xbf16>
    %cst = arith.constant dense<0.000000e+00> : vector<256x64xf32>
    %3 = tpu.matmul %1, %2, %cst {dimension_numbers = #tpu.dot_dimension_numbers<[1], [0], [0], [1], [0, 0, 1, 1], [], []>} : vector<256x32xbf16>, vector<32x64xbf16>, vector<256x64xf32> -> vector<256x64xf32>
    %c0_3 = arith.constant 0 : index
    %c0_4 = arith.constant 0 : index
    %4 = vector.load %arg3[%c0_3, %c0_4] : memref<1x64xf32, #tpu.memory_space<vmem>>, vector<1x64xf32>
    %5 = vector.broadcast %4 : vector<1x64xf32> to vector<256x64xf32>
    %6 = arith.addf %3, %5 : vector<256x64xf32>
    %cst_5 = arith.constant 0.000000e+00 : f32
    %7 = vector.broadcast %cst_5 : f32 to vector<256x64xf32>
    %8 = arith.maximumf %6, %7 : vector<256x64xf32>
    %9 = arith.truncf %8 : vector<256x64xf32> to vector<256x64xbf16>
    %c0_6 = arith.constant 0 : index
    %c0_7 = arith.constant 0 : index
    %10 = vector.load %arg4[%c0_6, %c0_7] : memref<64x32xbf16, #tpu.memory_space<vmem>>, vector<64x32xbf16>
    %cst_8 = arith.constant dense<0.000000e+00> : vector<256x32xf32>
    %11 = tpu.matmul %9, %10, %cst_8 {dimension_numbers = #tpu.dot_dimension_numbers<[1], [0], [0], [1], [0, 0, 1, 1], [], []>} : vector<256x64xbf16>, vector<64x32xbf16>, vector<256x32xf32> -> vector<256x32xf32>
    %c0_9 = arith.constant 0 : index
    %c0_10 = arith.constant 0 : index
    %12 = vector.load %arg5[%c0_9, %c0_10] : memref<1x32xf32, #tpu.memory_space<vmem>>, vector<1x32xf32>
    %13 = vector.broadcast %12 : vector<1x32xf32> to vector<256x32xf32>
    %14 = arith.addf %11, %13 : vector<256x32xf32>
    %cst_11 = arith.constant 0.000000e+00 : f32
    %15 = vector.broadcast %cst_11 : f32 to vector<256x32xf32>
    %16 = arith.maximumf %14, %15 : vector<256x32xf32>
    %17 = arith.truncf %16 : vector<256x32xf32> to vector<256x32xbf16>
    %c0_12 = arith.constant 0 : index
    %c0_13 = arith.constant 0 : index
    %18 = vector.load %arg6[%c0_12, %c0_13] : memref<32x16xbf16, #tpu.memory_space<vmem>>, vector<32x16xbf16>
    %cst_14 = arith.constant dense<0.000000e+00> : vector<256x16xf32>
    %19 = tpu.matmul %17, %18, %cst_14 {dimension_numbers = #tpu.dot_dimension_numbers<[1], [0], [0], [1], [0, 0, 1, 1], [], []>} : vector<256x32xbf16>, vector<32x16xbf16>, vector<256x16xf32> -> vector<256x16xf32>
    %c0_15 = arith.constant 0 : index
    %c0_16 = arith.constant 0 : index
    %20 = vector.load %arg7[%c0_15, %c0_16] : memref<1x16xf32, #tpu.memory_space<vmem>>, vector<1x16xf32>
    %21 = vector.broadcast %20 : vector<1x16xf32> to vector<256x16xf32>
    %22 = arith.addf %19, %21 : vector<256x16xf32>
    %cst_17 = arith.constant 0.000000e+00 : f32
    %23 = vector.broadcast %cst_17 : f32 to vector<256x16xf32>
    %24 = arith.maximumf %22, %23 : vector<256x16xf32>
    %c0_18 = arith.constant 0 : index
    %c0_19 = arith.constant 0 : index
    %25 = vector.load %arg8[%c0_18, %c0_19] : memref<8x16xf32, #tpu.memory_space<vmem>>, vector<8x16xf32>
    %cst_20 = arith.constant dense<0.000000e+00> : vector<8x256xf32>
    %26 = tpu.matmul %25, %24, %cst_20 {dimension_numbers = #tpu.dot_dimension_numbers<[1], [1], [0], [0], [0, 0, 1, 0], [], []>} : vector<8x16xf32>, vector<256x16xf32>, vector<8x256xf32> -> vector<8x256xf32>
    %27 = vector.extract_strided_slice %26 {offsets = [0, 0], sizes = [1, 256], strides = [1, 1]} : vector<8x256xf32> to vector<1x256xf32>
    %c0_21 = arith.constant 0 : index
    %c0_22 = arith.constant 0 : index
    %28 = vector.load %arg9[%c0_21, %c0_22] : memref<1x1xf32, #tpu.memory_space<vmem>>, vector<1x1xf32>
    %29 = vector.broadcast %28 : vector<1x1xf32> to vector<1x256xf32>
    %30 = arith.addf %27, %29 : vector<1x256xf32>
    %31 = vector.shape_cast %30 : vector<1x256xf32> to vector<1x1x256xf32>
    %c0_23 = arith.constant 0 : index
    %c0_24 = arith.constant 0 : index
    %c0_25 = arith.constant 0 : index
    %32 = vector.load %arg10[%c0_23, %c0_24, %c0_25] : memref<1x1x256xf32, #tpu.memory_space<vmem>>, vector<1x1x256xf32>
    tpu.vector_store %arg10[%c0_23, %c0_24, %c0_25], %31 {strides = array<i32>} : memref<1x1x256xf32, #tpu.memory_space<vmem>>, vector<1x1x256xf32>,
    return
  }
  func.func @transform_0(%arg0: i32) -> (i32, i32) {
    %c0_i32 = arith.constant 0 : i32
    %c0_i32_0 = arith.constant 0 : i32
    return %arg0, %c0_i32 : i32, i32
  }
  func.func @transform_1(%arg0: i32) -> (i32, i32) {
    %c0_i32 = arith.constant 0 : i32
    %c0_i32_0 = arith.constant 0 : i32
    %c0_i32_1 = arith.constant 0 : i32
    return %c0_i32, %c0_i32_0 : i32, i32
  }
  func.func @transform_2(%arg0: i32) -> (i32, i32) {
    %c0_i32 = arith.constant 0 : i32
    %c0_i32_0 = arith.constant 0 : i32
    %c0_i32_1 = arith.constant 0 : i32
    return %c0_i32, %c0_i32_0 : i32, i32
  }
  func.func @transform_3(%arg0: i32) -> (i32, i32) {
    %c0_i32 = arith.constant 0 : i32
    %c0_i32_0 = arith.constant 0 : i32
    %c0_i32_1 = arith.constant 0 : i32
    return %c0_i32, %c0_i32_0 : i32, i32
  }
  func.func @transform_4(%arg0: i32) -> (i32, i32) {
    %c0_i32 = arith.constant 0 : i32
    %c0_i32_0 = arith.constant 0 : i32
    %c0_i32_1 = arith.constant 0 : i32
    return %c0_i32, %c0_i32_0 : i32, i32
  }
  func.func @transform_5(%arg0: i32) -> (i32, i32) {
    %c0_i32 = arith.constant 0 : i32
    %c0_i32_0 = arith.constant 0 : i32
    %c0_i32_1 = arith.constant 0 : i32
    return %c0_i32, %c0_i32_0 : i32, i32
  }
  func.func @transform_6(%arg0: i32) -> (i32, i32) {
    %c0_i32 = arith.constant 0 : i32
    %c0_i32_0 = arith.constant 0 : i32
    %c0_i32_1 = arith.constant 0 : i32
    return %c0_i32, %c0_i32_0 : i32, i32
  }
  func.func @transform_7(%arg0: i32) -> (i32, i32) {
    %c0_i32 = arith.constant 0 : i32
    %c0_i32_0 = arith.constant 0 : i32
    %c0_i32_1 = arith.constant 0 : i32
    return %c0_i32, %c0_i32_0 : i32, i32
  }
  func.func @transform_8(%arg0: i32) -> (i32, i32) {
    %c0_i32 = arith.constant 0 : i32
    %c0_i32_0 = arith.constant 0 : i32
    %c0_i32_1 = arith.constant 0 : i32
    return %c0_i32, %c0_i32_0 : i32, i32
  }
  func.func @transform_9(%arg0: i32) -> (i32, i32, i32) {
    %c0_i32 = arith.constant 0 : i32
    %c0_i32_0 = arith.constant 0 : i32
    %c0_i32_1 = arith.constant 0 : i32
    return %arg0, %c0_i32, %c0_i32_0 : i32, i32, i32
  }
}

</mosaic_0001>

<bundles_post_ra>
// kernel: tpu_custom_call.1
= control target key start
LH: loop header
LB: loop body
LE: loop exit
PB: predicated region body
PF: predicated region fallthrough
CT: control target
= control target key end

     0   :  { %s1909_s0 = inlined_call_operand.vmem [shape: f32[512,32], index: 0, kind: input, shape index: {}]   ;;  %s1910_s1 = inlined_call_operand.vmem [shape: bf16[32,64], index: 1, kind: input, shape index: {}]   ;;  %s1911_s2 = inlined_call_operand.vmem [shape: f32[1,64], index: 2, kind: input, shape index: {}]   ;;  %s1912_s3 = inlined_call_operand.vmem [shape: bf16[64,32], index: 3, kind: input, shape index: {}]   ;;  %s1913_s4 = inlined_call_operand.vmem [shape: f32[1,32], index: 4, kind: input, shape index: {}]   ;;  %s1914_s5 = inlined_call_operand.vmem [shape: bf16[32,16], index: 5, kind: input, shape index: {}]   ;;  %s1915_s6 = inlined_call_operand.vmem [shape: f32[1,16], index: 6, kind: input, shape index: {}]   ;;  %s1916_s7 = inlined_call_operand.vmem [shape: f32[8,16], index: 7, kind: input, shape index: {}]   ;;  %s1917_s8 = inlined_call_operand.<no memory space> [shape: f32[1,1], index: 8, kind: input, shape index: {}]   ;;  %s1918_s9 = inlined_call_operand.hbm [shape: f32[2,1,256], index: 9, kind: output, shape index: {}]  }
   0x1   :  { %v14_v0 = vstv %s1917_s8 }
   0x2   :  { %15 = vst [vmem:[#allocation2] sm:$0x1] %v14_v0 }
   0x3   :  { %16 = vsyncpa [#allocation4], 0 }
   0x4   :  { %18 = vsyncpa [#allocation4 + $0x1], 0  ;;  %s1532_s11 = smov 0   ;;  %s1534_s12 = smov 0  }
   0x5   :  { %s1536_s13 = smov 0   ;;  %s1538_s14 = smov 0  }
   0x6 LB: > { %s1553_s8 = sadd.s32 4294967295, %s1476_s14   ;;  %s1237_s15 = sadd.s32 4294967294, %s1476_s14   ;;  %s1476_s14 = sphi %s1538_s14, %s1924_s14   ;;  %s1472_s13 = sphi %s1536_s13, %s1923_s13   ;;  %s1468_s12 = sphi %s1534_s12, %s1922_s12   ;;  %s1464_s11 = sphi %s1532_s11, %s1921_s11  }
   0x7   : > { %s1557_s16 = sadd.s32 1, %s1476_s14   ;;  %s225_s17 = sadd.s32 1, %s1472_s13 }
   0x8   : > { %s222_s18 = ssub.s32 %s1476_s14, %s1557_s16  ;;  %p235_p0 = scmp.ne.s32.totalorder %s1472_s13, %s1468_s12 }
   0x9   : > { %p223_p1 = scmp.eq.s32.totalorder %s222_s18, 0  ;;  %p236_p2 = scmp.eq.s32.totalorder %s1553_s8, 1 }
   0xa   : > { %p241_p3 = scmp.ne.s32.totalorder %s1468_s12, %s1464_s11  ;;  %p242_p4 = scmp.eq.s32.totalorder %s1237_s15, 1 }
   0xb   : > { %s1568_s19 = scalar_select %p223_p1, %s1472_s13, %s225_s17  }
   0xc   : > { %p1570_p5 = por %p236_p2, %p235_p0  ;;  %p1574_p6 = por %p242_p4, %p241_p3 }
   0xd   : > { %p1240_p7 = scmp.ge.s32.totalorder %s1476_s14, 1  ;;  %p293_p8 = scmp.lt.s32.totalorder %s1476_s14, 3 }
   0xf   : > { %p294_p9 = pnand %p1240_p7, %p293_p8 }
  0x10   : > { %s1242_s24 = sshll.u32 (!%p294_p9), %s1553_s8, 5  ;;  %s326_s25 = sand.u32 (!%p294_p9), 1, %s1468_s12  }
  0x11   : > { %297 = sbr.rel (%p294_p9) target bundleno = 897 (0x381), region = 56  ;;  %p330_p10 = scmp.lt.s32.totalorder (!%p294_p9), %s1242_s24, 63 }
  0x12   : > { %s1241_s26 = sshll.u32 (!%p294_p9), %s326_s25, 1 }
  0x13   : > { %s328_s15 = scalar_lea.vmem (!%p294_p9), [#allocation3], %s1241_s26  ;;  %s1434_s26 = scalar_lea.hbm (!%p294_p9), %s1918_s9, 4 }
  0x16   : > { %v1363_v1 = vld [vmem:[%s1910_s1 + $0x8] sm:$0xff]  ;;  %v1362_v2 = vld [vmem:[%s1910_s1] sm:$0xff]  ;;  %s1926_s24 = smov (!%p330_p10, %s1242_s24), 63  ;;  %vm404_vm0 = vcmask 261120   ;;  %v1367_v23 = vld [vmem:[%s1912_s3 + $0x18] sm:$0xff]  ;;  %vm626_vm1 = vcmask 523264  }
  0x17   : > { %459 = vmatpush.bf16.msra.mxu0 %v1363_v1  ;;  %s1243_s27 = sshll.u32 %s1926_s24, 3  ;;  %679 = vmatpush.bf16.msra.mxu1 %v1367_v23  ;;  %v1366_v25 = vld [vmem:[%s1912_s3 + $0x10] sm:$0xff]  ;;  %v1365_v26 = vld [vmem:[%s1912_s3 + $0x8] sm:$0xff]  ;;  %v1364_v27 = vld [vmem:[%s1912_s3] sm:$0xff]  ;;  %vm1002_vm2 = vcmask 130048   ;;  %vm1154_vm3 = vcmask 1040384  }
  0x18   : > { %s1590_s30 = scalar_lea.vmem %s1909_s0, %s1243_s27  ;;  %v1633_v35 = vld [vmem:[%s1911_s2] ss:$0 sm:$0xff]  ;;  %s1359_s27 = sshll.u32 %s1553_s8, 1 }
  0x19   : > { %v336_v3 = vld [vmem:[%s1590_s30] sm:$0xff]  ;;  %v337_v4 = vld [vmem:[%s1590_s30 + $0x8] sm:$0xff]  ;;  %v338_v6 = vld [vmem:[%s1590_s30 + $0x10] sm:$0xff]  ;;  %s1173_s10 = scalar_lea.hbm %s1918_s9, %s1359_s27  ;;  %s1163_s8 = scalar_lea.sflag [#allocation4], %s326_s25 }
  0x1a   : > { %v368_v5 = vpack.c.bf16 %v337_v4, %v336_v3  ;;  %v339_v7 = vld [vmem:[%s1590_s30 + $0x18] sm:$0xff]  ;;  %v340_v9 = vld [vmem:[%s1590_s30 + $0x20] sm:$0xff]  ;;  %v341_v10 = vld [vmem:[%s1590_s30 + $0x28] sm:$0xff]  ;;  %s1177_s17 = sshll.u32 %s1173_s10, 4  ;;  %s1178_s17 = int_to_ptr.hbm [resolvable:$true] %s1177_s17 }
  0x1b   : > { %460 = vmatpush.bf16.msra.mxu0 %v1362_v2  ;;  %v369_v8 = vpack.c.bf16 %v339_v7, %v338_v6  ;;  %v370_v11 = vpack.c.bf16 %v341_v10, %v340_v9  ;;  %v342_v12 = vld [vmem:[%s1590_s30 + $0x30] sm:$0xff]  ;;  %v343_v13 = vld [vmem:[%s1590_s30 + $0x38] sm:$0xff]  ;;  %v344_v15 = vld [vmem:[%s1590_s30 + $0x40] sm:$0xff]  ;;  %680 = vmatpush.bf16.msra.mxu1 %v1366_v25  ;;  %s1428_s18 = sshra.s32 %s1178_s17, 4  ;;  %s1429_s18 = int_to_ptr.hbm [resolvable:$true] %s1428_s18 }
  0x1c   : > { %v371_v14 = vpack.c.bf16 %v343_v13, %v342_v12  ;;  %v345_v16 = vld [vmem:[%s1590_s30 + $0x48] sm:$0xff]  ;;  %v346_v18 = vld [vmem:[%s1590_s30 + $0x50] sm:$0xff]  ;;  %v347_v19 = vld [vmem:[%s1590_s30 + $0x58] sm:$0xff]  ;;  %s1430_s22 = scalar_lea.hbm %s1429_s18, 2  ;;  %p1435_p0 = scmp.lt.s32.totalorder %s1429_s18, %s1918_s9 }
  0x1d   : > { %v372_v17 = vpack.c.bf16 %v345_v16, %v344_v15  ;;  %v373_v20 = vpack.c.bf16 %v347_v19, %v346_v18  ;;  %v348_v21 = vld [vmem:[%s1590_s30 + $0x60] sm:$0xff]  ;;  %v349_v22 = vld [vmem:[%s1590_s30 + $0x68] sm:$0xff]  ;;  %v350_v28 = vld [vmem:[%s1590_s30 + $0x70] sm:$0xff]  ;;  %p1431_p11 = scmp.ne.s32.totalorder %s1429_s18, %s1430_s22  ;;  %p1436_p1 = scmp.lt.s32.totalorder %s1434_s26, %s1430_s22 }
  0x1e   : > { %1252 = vmatmul.msk.bf16.vlgmr.msra.gmra.mxu0 %vm404_vm0, %v368_v5  ;;  %v374_v24 = vpack.c.bf16 %v349_v22, %v348_v21  ;;  %v351_v29 = vld [vmem:[%s1590_s30 + $0x78] sm:$0xff]  ;;  %v352_v31 = vld [vmem:[%s1590_s30 + $0x80] sm:$0xff]  ;;  %v353_v32 = vld [vmem:[%s1590_s30 + $0x88] sm:$0xff] }
  0x1f   : > { %681 = vmatpush.bf16.msra.mxu1 %v1365_v26  ;;  %v375_v30 = vpack.c.bf16 %v351_v29, %v350_v28  ;;  %v376_v33 = vpack.c.bf16 %v353_v32, %v352_v31  ;;  %v354_v41 = vld [vmem:[%s1590_s30 + $0x90] sm:$0xff]  ;;  %v355_v42 = vld [vmem:[%s1590_s30 + $0x98] sm:$0xff]  ;;  %v356_v51 = vld [vmem:[%s1590_s30 + $0xa0] sm:$0xff]  ;;  %p1432_p12 = pnand %p1431_p11, %p1570_p5  ;;  %p1437_p2 = por %p1436_p1, %p1435_p0 }
  0x20   : > { %v377_v44 = vpack.c.bf16 %v355_v42, %v354_v41  ;;  %v357_v52 = vld [vmem:[%s1590_s30 + $0xa8] sm:$0xff]  ;;  %v358_v61 = vld [vmem:[%s1590_s30 + $0xb0] sm:$0xff]  ;;  %v359_v62 = vld [vmem:[%s1590_s30 + $0xb8] sm:$0xff] }
  0x21   : > { %v378_v54 = vpack.c.bf16 %v357_v52, %v356_v51  ;;  %v379_v0 = vpack.c.bf16 %v359_v62, %v358_v61  ;;  %v360_v7 = vld [vmem:[%s1590_s30 + $0xc0] sm:$0xff]  ;;  %v363_v18 = vld [vmem:[%s1590_s30 + $0xd8] sm:$0xff]  ;;  %v365_v28 = vld [vmem:[%s1590_s30 + $0xe8] sm:$0xff]  ;;  %p1433_p13 = pneg %p1432_p12 }
  0x23   : > { %682 = vmatpush.bf16.msra.mxu1 %v1364_v27  ;;  %v364_v27 = vld [vmem:[%s1590_s30 + $0xe0] sm:$0xff]  ;;  %p1438_p3 = pnand %p1437_p2, %p1433_p13 }
  0x2e   : > { %1253 = vmatmul.msk.bf16.gmra.mxu0 %vm404_vm0, %v369_v8  ;;  %v361_v8 = vld [vmem:[%s1590_s30 + $0xc8] sm:$0xff] }
  0x2f   : > { %v380_v10 = vpack.c.bf16 %v361_v8, %v360_v7 }
  0x3e   : > { %1254 = vmatmul.msk.bf16.gmra.mxu0 %vm404_vm0, %v370_v11 }
  0x4e   : > { %1255 = vmatmul.msk.bf16.gmra.mxu0 %vm404_vm0, %v371_v14 }
  0x5e   : > { %1256 = vmatmul.msk.bf16.gmra.mxu0 %vm404_vm0, %v372_v17  ;;  %v362_v17 = vld [vmem:[%s1590_s30 + $0xd0] sm:$0xff] }
  0x6e   : > { %1257 = vmatmul.msk.bf16.gmra.mxu0 %vm404_vm0, %v373_v20  ;;  %v381_v20 = vpack.c.bf16 %v363_v18, %v362_v17 }
  0x7e   : > { %1258 = vmatmul.msk.bf16.gmra.mxu0 %vm404_vm0, %v374_v24 }
  0x8e   : > { %1259 = vmatmul.msk.bf16.gmra.mxu0 %vm404_vm0, %v375_v30  ;;  %v382_v30 = vpack.c.bf16 %v365_v28, %v364_v27 }
  0x9b   : > { %v462_v34 = vpop.f32.mrf.mxu0 }
  0x9c   : > { %v463_v36 = vadd.f32 %v1633_v35, %v462_v34 }
  0x9e   : > { %1260 = vmatmul.msk.bf16.gmra.mxu0 %vm404_vm0, %v376_v33  ;;  %v542_v39 = vmax.f32 %v463_v36, 0.0 }
  0xa3   : > { %v464_v37 = vpop.f32.mrf.mxu0 }
  0xa4   : > { %v465_v38 = vadd.f32 %v1633_v35, %v464_v37 }
  0xa6   : > { %v543_v40 = vmax.f32 %v465_v38, 0.0  ;;  %v366_v38 = vld [vmem:[%s1590_s30 + $0xf0] sm:$0xff] }
  0xa8   : > { %v574_v43 = vpack.c.bf16 %v543_v40, %v542_v39  ;;  %v367_v39 = vld [vmem:[%s1590_s30 + $0xf8] sm:$0xff]  ;;  %s1175_s30 = sshll.u32 %s328_s15, 4  ;;  %s1176_s30 = int_to_ptr.vmem [resolvable:$true] %s1175_s30 }
  0xa9   : > { %v383_v41 = vpack.c.bf16 %v367_v39, %v366_v38 }
  0xaa   : > { %1284 = vmatmul.msk.bf16.vlgmr.msra.gmra.mxu1 %vm626_vm1, %v574_v43  ;;  %v1369_v43 = vld [vmem:[%s1914_s5 + $0x8] sm:$0xff] }
  0xab   : > { %v467_v45 = vpop.f32.mrf.mxu0  ;;  %886 = vmatpush.bf16.msra.mxu2 %v1369_v43 }
  0xac   : > { %v468_v46 = vadd.f32 %v1633_v35, %v467_v45 }
  0xae   : > { %1261 = vmatmul.msk.bf16.gmra.mxu0 %vm404_vm0, %v377_v44  ;;  %v544_v49 = vmax.f32 %v468_v46, 0.0  ;;  %v1368_v44 = vld [vmem:[%s1914_s5] sm:$0xff] }
  0xaf   : > { %887 = vmatpush.bf16.msra.mxu2 %v1368_v44 }
  0xb3   : > { %v469_v47 = vpop.f32.mrf.mxu0 }
  0xb4   : > { %v470_v48 = vadd.f32 %v1633_v35, %v469_v47 }
  0xb6   : > { %v545_v50 = vmax.f32 %v470_v48, 0.0 }
  0xb8   : > { %v575_v53 = vpack.c.bf16 %v545_v50, %v544_v49 }
  0xba   : > { %1285 = vmatmul.msk.bf16.gmra.mxu1 %vm626_vm1, %v575_v53 }
  0xbb   : > { %v472_v55 = vpop.f32.mrf.mxu0 }
  0xbc   : > { %v473_v56 = vadd.f32 %v1633_v35, %v472_v55 }
  0xbe   : > { %1262 = vmatmul.msk.bf16.gmra.mxu0 %vm404_vm0, %v378_v54  ;;  %v546_v59 = vmax.f32 %v473_v56, 0.0 }
  0xc3   : > { %v474_v57 = vpop.f32.mrf.mxu0 }
  0xc4   : > { %v475_v58 = vadd.f32 %v1633_v35, %v474_v57 }
  0xc6   : > { %v547_v60 = vmax.f32 %v475_v58, 0.0 }
  0xc8   : > { %v576_v63 = vpack.c.bf16 %v547_v60, %v546_v59  ;;  %v1692_v59 = vld [vmem:[%s1913_s4] ss:$0 sm:$0xff] }
  0xca   : > { %1286 = vmatmul.msk.bf16.gmra.mxu1 %vm626_vm1, %v576_v63 }
  0xcb   : > { %v477_v1 = vpop.f32.mrf.mxu0 }
  0xcc   : > { %v478_v2 = vadd.f32 %v1633_v35, %v477_v1 }
  0xce   : > { %1263 = vmatmul.msk.bf16.gmra.mxu0 %vm404_vm0, %v379_v0  ;;  %v548_v5 = vmax.f32 %v478_v2, 0.0 }
  0xd3   : > { %v479_v3 = vpop.f32.mrf.mxu0 }
  0xd4   : > { %v480_v4 = vadd.f32 %v1633_v35, %v479_v3 }
  0xd6   : > { %v549_v6 = vmax.f32 %v480_v4, 0.0 }
  0xd8   : > { %v577_v9 = vpack.c.bf16 %v549_v6, %v548_v5 }
  0xda   : > { %1287 = vmatmul.msk.bf16.gmra.mxu1 %vm626_vm1, %v577_v9 }
  0xdb   : > { %v482_v11 = vpop.f32.mrf.mxu0 }
  0xdc   : > { %v483_v12 = vadd.f32 %v1633_v35, %v482_v11 }
  0xde   : > { %1264 = vmatmul.msk.bf16.gmra.mxu0 %vm404_vm0, %v380_v10  ;;  %v550_v15 = vmax.f32 %v483_v12, 0.0 }
  0xe3   : > { %v484_v13 = vpop.f32.mrf.mxu0 }
  0xe4   : > { %v485_v14 = vadd.f32 %v1633_v35, %v484_v13 }
  0xe6   : > { %v551_v16 = vmax.f32 %v485_v14, 0.0 }
  0xe8   : > { %v578_v19 = vpack.c.bf16 %v551_v16, %v550_v15 }
  0xea   : > { %1288 = vmatmul.msk.bf16.gmra.mxu1 %vm626_vm1, %v578_v19 }
  0xeb   : > { %v487_v21 = vpop.f32.mrf.mxu0 }
  0xec   : > { %v488_v22 = vadd.f32 %v1633_v35, %v487_v21 }
  0xee   : > { %1265 = vmatmul.msk.bf16.gmra.mxu0 %vm404_vm0, %v381_v20  ;;  %v552_v25 = vmax.f32 %v488_v22, 0.0 }
  0xf3   : > { %v489_v23 = vpop.f32.mrf.mxu0 }
  0xf4   : > { %v490_v24 = vadd.f32 %v1633_v35, %v489_v23 }
  0xf6   : > { %v553_v26 = vmax.f32 %v490_v24, 0.0 }
  0xf8   : > { %v579_v29 = vpack.c.bf16 %v553_v26, %v552_v25 }
  0xfa   : > { %1289 = vmatmul.msk.bf16.gmra.mxu1 %vm626_vm1, %v579_v29 }
  0xfb   : > { %v492_v31 = vpop.f32.mrf.mxu0 }
  0xfc   : > { %v493_v32 = vadd.f32 %v1633_v35, %v492_v31 }
  0xfe   : > { %1266 = vmatmul.msk.bf16.gmra.mxu0 %vm404_vm0, %v382_v30  ;;  %v554_v36 = vmax.f32 %v493_v32, 0.0 }
 0x103   : > { %v494_v33 = vpop.f32.mrf.mxu0 }
 0x104   : > { %v495_v34 = vadd.f32 %v1633_v35, %v494_v33 }
 0x106   : > { %v555_v37 = vmax.f32 %v495_v34, 0.0 }
 0x108   : > { %v580_v40 = vpack.c.bf16 %v555_v37, %v554_v36 }
 0x10a   : > { %1290 = vmatmul.msk.bf16.gmra.mxu1 %vm626_vm1, %v580_v40 }
 0x10b   : > { %v497_v42 = vpop.f32.mrf.mxu0 }
 0x10c   : > { %v498_v45 = vadd.f32 %v1633_v35, %v497_v42 }
 0x10e   : > { %1267 = vmatmul.msk.bf16.gmra.mxu0 %vm404_vm0, %v383_v41  ;;  %v556_v48 = vmax.f32 %v498_v45, 0.0 }
 0x113   : > { %v499_v46 = vpop.f32.mrf.mxu0 }
 0x114   : > { %v500_v47 = vadd.f32 %v1633_v35, %v499_v46 }
 0x116   : > { %v557_v49 = vmax.f32 %v500_v47, 0.0 }
 0x118   : > { %v581_v50 = vpack.c.bf16 %v557_v49, %v556_v48 }
 0x11a   : > { %1291 = vmatmul.msk.bf16.gmra.mxu1 %vm626_vm1, %v581_v50 }
 0x11b   : > { %v502_v51 = vpop.f32.mrf.mxu0 }
 0x11c   : > { %v503_v52 = vadd.f32 %v1633_v35, %v502_v51 }
 0x11e   : > { %v558_v55 = vmax.f32 %v503_v52, 0.0 }
 0x123   : > { %v504_v53 = vpop.f32.mrf.mxu0 }
 0x124   : > { %v505_v54 = vadd.f32 %v1633_v35, %v504_v53 }
 0x126   : > { %v559_v56 = vmax.f32 %v505_v54, 0.0 }
 0x127   : > { %v684_v57 = vpop.f32.mrf.mxu1 }
 0x128   : > { %v582_v58 = vpack.c.bf16 %v559_v56, %v558_v55  ;;  %v685_v61 = vadd.f32 %v1692_v59, %v684_v57 }
 0x12a   : > { %1292 = vmatmul.msk.bf16.gmra.mxu1 %vm626_vm1, %v582_v58  ;;  %v764_v0 = vmax.f32 %v685_v61, 0.0 }
 0x12b   : > { %v507_v60 = vpop.f32.mrf.mxu0 }
 0x12c   : > { %v508_v1 = vadd.f32 %v1633_v35, %v507_v60 }
 0x12e   : > { %v560_v6 = vmax.f32 %v508_v1, 0.0 }
 0x12f   : > { %v686_v62 = vpop.f32.mrf.mxu1 }
 0x130   : > { %v687_v63 = vadd.f32 %v1692_v59, %v686_v62 }
 0x132   : > { %v765_v2 = vmax.f32 %v687_v63, 0.0 }
 0x133   : > { %v509_v3 = vpop.f32.mrf.mxu0 }
 0x134   : > { %v510_v4 = vadd.f32 %v1633_v35, %v509_v3  ;;  %v796_v5 = vpack.c.bf16 %v765_v2, %v764_v0 }
 0x136   : > { %v561_v7 = vmax.f32 %v510_v4, 0.0  ;;  %1308 = vmatmul.msk.bf16.vlgmr.msra.gmra.mxu2 %vm404_vm0, %v796_v5 }
 0x137   : > { %v689_v8 = vpop.f32.mrf.mxu1 }
 0x138   : > { %v583_v9 = vpack.c.bf16 %v561_v7, %v560_v6  ;;  %v690_v11 = vadd.f32 %v1692_v59, %v689_v8 }
 0x13a   : > { %1293 = vmatmul.msk.bf16.gmra.mxu1 %vm626_vm1, %v583_v9  ;;  %v766_v14 = vmax.f32 %v690_v11, 0.0 }
 0x13b   : > { %v512_v10 = vpop.f32.mrf.mxu0 }
 0x13c   : > { %v513_v15 = vadd.f32 %v1633_v35, %v512_v10 }
 0x13e   : > { %v562_v20 = vmax.f32 %v513_v15, 0.0 }
 0x13f   : > { %v691_v12 = vpop.f32.mrf.mxu1 }
 0x140   : > { %v692_v13 = vadd.f32 %v1692_v59, %v691_v12 }
 0x142   : > { %v767_v16 = vmax.f32 %v692_v13, 0.0 }
 0x143   : > { %v514_v17 = vpop.f32.mrf.mxu0 }
 0x144   : > { %v515_v18 = vadd.f32 %v1633_v35, %v514_v17  ;;  %v797_v19 = vpack.c.bf16 %v767_v16, %v766_v14 }
 0x146   : > { %v563_v21 = vmax.f32 %v515_v18, 0.0  ;;  %1309 = vmatmul.msk.bf16.gmra.mxu2 %vm404_vm0, %v797_v19 }
 0x147   : > { %v694_v22 = vpop.f32.mrf.mxu1 }
 0x148   : > { %v584_v23 = vpack.c.bf16 %v563_v21, %v562_v20  ;;  %v695_v25 = vadd.f32 %v1692_v59, %v694_v22 }
 0x14a   : > { %1294 = vmatmul.msk.bf16.gmra.mxu1 %vm626_vm1, %v584_v23  ;;  %v768_v28 = vmax.f32 %v695_v25, 0.0 }
 0x14b   : > { %v517_v24 = vpop.f32.mrf.mxu0 }
 0x14c   : > { %v518_v29 = vadd.f32 %v1633_v35, %v517_v24 }
 0x14e   : > { %v564_v34 = vmax.f32 %v518_v29, 0.0 }
 0x14f   : > { %v696_v26 = vpop.f32.mrf.mxu1 }
 0x150   : > { %v697_v27 = vadd.f32 %v1692_v59, %v696_v26 }
 0x152   : > { %v769_v30 = vmax.f32 %v697_v27, 0.0 }
 0x153   : > { %v519_v31 = vpop.f32.mrf.mxu0 }
 0x154   : > { %v520_v32 = vadd.f32 %v1633_v35, %v519_v31  ;;  %v798_v33 = vpack.c.bf16 %v769_v30, %v768_v28 }
 0x156   : > { %v565_v36 = vmax.f32 %v520_v32, 0.0  ;;  %1310 = vmatmul.msk.bf16.gmra.mxu2 %vm404_vm0, %v798_v33 }
 0x157   : > { %v699_v37 = vpop.f32.mrf.mxu1 }
 0x158   : > { %v585_v38 = vpack.c.bf16 %v565_v36, %v564_v34  ;;  %v700_v40 = vadd.f32 %v1692_v59, %v699_v37 }
 0x15a   : > { %1295 = vmatmul.msk.bf16.gmra.mxu1 %vm626_vm1, %v585_v38  ;;  %v770_v43 = vmax.f32 %v700_v40, 0.0 }
 0x15b   : > { %v522_v39 = vpop.f32.mrf.mxu0 }
 0x15c   : > { %v523_v44 = vadd.f32 %v1633_v35, %v522_v39 }
 0x15e   : > { %v566_v49 = vmax.f32 %v523_v44, 0.0 }
 0x15f   : > { %v701_v41 = vpop.f32.mrf.mxu1 }
 0x160   : > { %v702_v42 = vadd.f32 %v1692_v59, %v701_v41 }
 0x162   : > { %v771_v45 = vmax.f32 %v702_v42, 0.0 }
 0x163   : > { %v524_v46 = vpop.f32.mrf.mxu0 }
 0x164   : > { %v525_v47 = vadd.f32 %v1633_v35, %v524_v46  ;;  %v799_v48 = vpack.c.bf16 %v771_v45, %v770_v43 }
 0x166   : > { %v567_v50 = vmax.f32 %v525_v47, 0.0  ;;  %1311 = vmatmul.msk.bf16.gmra.mxu2 %vm404_vm0, %v799_v48 }
 0x167   : > { %v704_v51 = vpop.f32.mrf.mxu1 }
 0x168   : > { %v586_v52 = vpack.c.bf16 %v567_v50, %v566_v49  ;;  %v705_v54 = vadd.f32 %v1692_v59, %v704_v51 }
 0x16a   : > { %1296 = vmatmul.msk.bf16.gmra.mxu1 %vm626_vm1, %v586_v52  ;;  %v772_v57 = vmax.f32 %v705_v54, 0.0 }
 0x16b   : > { %v527_v53 = vpop.f32.mrf.mxu0 }
 0x16c   : > { %v528_v58 = vadd.f32 %v1633_v35, %v527_v53 }
 0x16e   : > { %v568_v0 = vmax.f32 %v528_v58, 0.0 }
 0x16f   : > { %v706_v55 = vpop.f32.mrf.mxu1 }
 0x170   : > { %v707_v56 = vadd.f32 %v1692_v59, %v706_v55 }
 0x172   : > { %v773_v60 = vmax.f32 %v707_v56, 0.0 }
 0x173   : > { %v529_v61 = vpop.f32.mrf.mxu0 }
 0x174   : > { %v800_v62 = vpack.c.bf16 %v773_v60, %v772_v57  ;;  %v530_v63 = vadd.f32 %v1633_v35, %v529_v61 }
 0x176   : > { %v569_v1 = vmax.f32 %v530_v63, 0.0  ;;  %1312 = vmatmul.msk.bf16.gmra.mxu2 %vm404_vm0, %v800_v62 }
 0x177   : > { %v709_v2 = vpop.f32.mrf.mxu1 }
 0x178   : > { %v587_v3 = vpack.c.bf16 %v569_v1, %v568_v0  ;;  %v710_v5 = vadd.f32 %v1692_v59, %v709_v2 }
 0x17a   : > { %1297 = vmatmul.msk.bf16.gmra.mxu1 %vm626_vm1, %v587_v3  ;;  %v774_v8 = vmax.f32 %v710_v5, 0.0 }
 0x17b   : > { %v532_v4 = vpop.f32.mrf.mxu0 }
 0x17c   : > { %v533_v9 = vadd.f32 %v1633_v35, %v532_v4 }
 0x17e   : > { %v570_v14 = vmax.f32 %v533_v9, 0.0 }
 0x17f   : > { %v711_v6 = vpop.f32.mrf.mxu1 }
 0x180   : > { %v712_v7 = vadd.f32 %v1692_v59, %v711_v6 }
 0x182   : > { %v775_v10 = vmax.f32 %v712_v7, 0.0 }
 0x183   : > { %v534_v11 = vpop.f32.mrf.mxu0 }
 0x184   : > { %v801_v12 = vpack.c.bf16 %v775_v10, %v774_v8  ;;  %v535_v13 = vadd.f32 %v1633_v35, %v534_v11 }
 0x186   : > { %v571_v15 = vmax.f32 %v535_v13, 0.0  ;;  %1313 = vmatmul.msk.bf16.gmra.mxu2 %vm404_vm0, %v801_v12 }
 0x187   : > { %v714_v16 = vpop.f32.mrf.mxu1 }
 0x188   : > { %v588_v17 = vpack.c.bf16 %v571_v15, %v570_v14  ;;  %v715_v19 = vadd.f32 %v1692_v59, %v714_v16 }
 0x18a   : > { %1298 = vmatmul.msk.bf16.gmra.mxu1 %vm626_vm1, %v588_v17  ;;  %v776_v22 = vmax.f32 %v715_v19, 0.0 }
 0x18b   : > { %v537_v18 = vpop.f32.mrf.mxu0 }
 0x18c   : > { %v538_v23 = vadd.f32 %v1633_v35, %v537_v18 }
 0x18e   : > { %v572_v28 = vmax.f32 %v538_v23, 0.0 }
 0x18f   : > { %v716_v20 = vpop.f32.mrf.mxu1 }
 0x190   : > { %v717_v21 = vadd.f32 %v1692_v59, %v716_v20 }
 0x192   : > { %v777_v24 = vmax.f32 %v717_v21, 0.0 }
 0x193   : > { %v539_v25 = vpop.f32.mrf.mxu0 }
 0x194   : > { %v802_v26 = vpack.c.bf16 %v777_v24, %v776_v22  ;;  %v540_v27 = vadd.f32 %v1633_v35, %v539_v25 }
 0x196   : > { %v573_v29 = vmax.f32 %v540_v27, 0.0  ;;  %1314 = vmatmul.msk.bf16.gmra.mxu2 %vm404_vm0, %v802_v26 }
 0x197   : > { %v719_v30 = vpop.f32.mrf.mxu1 }
 0x198   : > { %v589_v31 = vpack.c.bf16 %v573_v29, %v572_v28  ;;  %v720_v32 = vadd.f32 %v1692_v59, %v719_v30 }
 0x19a   : > { %1299 = vmatmul.msk.bf16.gmra.mxu1 %vm626_vm1, %v589_v31  ;;  %v778_v36 = vmax.f32 %v720_v32, 0.0 }
 0x19f   : > { %v721_v33 = vpop.f32.mrf.mxu1 }
 0x1a0   : > { %v722_v34 = vadd.f32 %v1692_v59, %v721_v33 }
 0x1a2   : > { %v779_v37 = vmax.f32 %v722_v34, 0.0 }
 0x1a4   : > { %v803_v38 = vpack.c.bf16 %v779_v37, %v778_v36 }
 0x1a6   : > { %1315 = vmatmul.msk.bf16.gmra.mxu2 %vm404_vm0, %v803_v38 }
 0x1a7   : > { %v724_v39 = vpop.f32.mrf.mxu1 }
 0x1a8   : > { %v725_v35 = vadd.f32 %v1692_v59, %v724_v39 }
 0x1aa   : > { %v780_v42 = vmax.f32 %v725_v35, 0.0 }
 0x1af   : > { %v726_v40 = vpop.f32.mrf.mxu1 }
 0x1b0   : > { %v727_v41 = vadd.f32 %v1692_v59, %v726_v40 }
 0x1b2   : > { %v781_v43 = vmax.f32 %v727_v41, 0.0 }
 0x1b4   : > { %v804_v44 = vpack.c.bf16 %v781_v43, %v780_v42 }
 0x1b6   : > { %1316 = vmatmul.msk.bf16.gmra.mxu2 %vm404_vm0, %v804_v44 }
 0x1b7   : > { %v729_v45 = vpop.f32.mrf.mxu1 }
 0x1b8   : > { %v730_v47 = vadd.f32 %v1692_v59, %v729_v45 }
 0x1b9   : > { %v1743_v46 = vpop.f32.mrf.mxu2 }
 0x1ba   : > { %v782_v51 = vmax.f32 %v730_v47, 0.0  ;;  %v1783_v47 = vld [vmem:[%s1915_s6] ss:$0 sm:$0xff] }
 0x1bf   : > { %v731_v48 = vpop.f32.mrf.mxu1 }
 0x1c0   : > { %v732_v49 = vadd.f32 %v1692_v59, %v731_v48 }
 0x1c1   : > { %v1747_v50 = vpop.f32.mrf.mxu2 }
 0x1c2   : > { %v783_v52 = vmax.f32 %v732_v49, 0.0 }
 0x1c4   : > { %v805_v53 = vpack.c.bf16 %v783_v52, %v782_v51 }
 0x1c6   : > { %1317 = vmatmul.msk.bf16.gmra.mxu2 %vm404_vm0, %v805_v53 }
 0x1c7   : > { %v734_v54 = vpop.f32.mrf.mxu1 }
 0x1c8   : > { %v735_v56 = vadd.f32 %v1692_v59, %v734_v54 }
 0x1c9   : > { %v1750_v55 = vpop.f32.mrf.mxu2 }
 0x1ca   : > { %v784_v61 = vmax.f32 %v735_v56, 0.0 }
 0x1cf   : > { %v736_v57 = vpop.f32.mrf.mxu1 }
 0x1d0   : > { %v737_v58 = vadd.f32 %v1692_v59, %v736_v57 }
 0x1d1   : > { %v1754_v60 = vpop.f32.mrf.mxu2 }
 0x1d2   : > { %v785_v62 = vmax.f32 %v737_v58, 0.0 }
 0x1d4   : > { %v806_v63 = vpack.c.bf16 %v785_v62, %v784_v61 }
 0x1d6   : > { %1318 = vmatmul.msk.bf16.gmra.mxu2 %vm404_vm0, %v806_v63 }
 0x1d7   : > { %v739_v0 = vpop.f32.mrf.mxu1 }
 0x1d8   : > { %v740_v2 = vadd.f32 %v1692_v59, %v739_v0 }
 0x1d9   : > { %v1757_v1 = vpop.f32.mrf.mxu2 }
 0x1da   : > { %v786_v6 = vmax.f32 %v740_v2, 0.0 }
 0x1df   : > { %v741_v3 = vpop.f32.mrf.mxu1 }
 0x1e0   : > { %v742_v4 = vadd.f32 %v1692_v59, %v741_v3 }
 0x1e1   : > { %v1761_v5 = vpop.f32.mrf.mxu2 }
 0x1e2   : > { %v787_v7 = vmax.f32 %v742_v4, 0.0 }
 0x1e4   : > { %v807_v8 = vpack.c.bf16 %v787_v7, %v786_v6 }
 0x1e6   : > { %1319 = vmatmul.msk.bf16.gmra.mxu2 %vm404_vm0, %v807_v8 }
 0x1e7   : > { %v744_v9 = vpop.f32.mrf.mxu1 }
 0x1e8   : > { %v745_v11 = vadd.f32 %v1692_v59, %v744_v9 }
 0x1e9   : > { %v1764_v10 = vpop.f32.mrf.mxu2 }
 0x1ea   : > { %v788_v15 = vmax.f32 %v745_v11, 0.0 }
 0x1ef   : > { %v746_v12 = vpop.f32.mrf.mxu1 }
 0x1f0   : > { %v747_v13 = vadd.f32 %v1692_v59, %v746_v12  ;;  %v905_v12 = vadd.f32 %v1783_v47, %v1764_v10  ;;  %v897_v10 = vadd.f32 %v1783_v47, %v1754_v60  ;;  %v890_v60 = vadd.f32 %v1783_v47, %v1743_v46 }
 0x1f1   : > { %v1768_v14 = vpop.f32.mrf.mxu2 }
 0x1f2   : > { %v789_v16 = vmax.f32 %v747_v13, 0.0  ;;  %v907_v8 = vadd.f32 %v1783_v47, %v1768_v14  ;;  %v900_v14 = vadd.f32 %v1783_v47, %v1757_v1 }
 0x1f4   : > { %v808_v17 = vpack.c.bf16 %v789_v16, %v788_v15  ;;  %v976_v13 = vmax.f32 %v907_v8, 0.0  ;;  %v902_v15 = vadd.f32 %v1783_v47, %v1761_v5  ;;  %v975_v16 = vmax.f32 %v905_v12, 0.0 }
 0x1f5   : > { %v895_v5 = vadd.f32 %v1783_v47, %v1750_v55 }
 0x1f6   : > { %1320 = vmatmul.msk.bf16.gmra.mxu2 %vm404_vm0, %v808_v17 }
 0x1f7   : > { %v749_v18 = vpop.f32.mrf.mxu1  ;;  %v971_v1 = vmax.f32 %v895_v5, 0.0 }
 0x1f8   : > { %v750_v20 = vadd.f32 %v1692_v59, %v749_v18  ;;  %v974_v18 = vmax.f32 %v902_v15, 0.0 }
 0x1f9   : > { %v909_v19 = vpop.f32.mrf.mxu2 }
 0x1fa   : > { %v790_v24 = vmax.f32 %v750_v20, 0.0  ;;  %v910_v6 = vadd.f32 %v1783_v47, %v909_v19  ;;  %v973_v19 = vmax.f32 %v900_v14, 0.0 }
 0x1fc   : > { %v977_v9 = vmax.f32 %v910_v6, 0.0 }
 0x1ff   : > { %v751_v21 = vpop.f32.mrf.mxu1 }
 0x200   : > { %v752_v22 = vadd.f32 %v1692_v59, %v751_v21  ;;  %v972_v21 = vmax.f32 %v897_v10, 0.0 }
 0x201   : > { %v911_v23 = vpop.f32.mrf.mxu2 }
 0x202   : > { %v791_v25 = vmax.f32 %v752_v22, 0.0  ;;  %v912_v2 = vadd.f32 %v1783_v47, %v911_v23  ;;  %v892_v22 = vadd.f32 %v1783_v47, %v1747_v50 }
 0x204   : > { %v809_v26 = vpack.c.bf16 %v791_v25, %v790_v24  ;;  %v978_v7 = vmax.f32 %v912_v2, 0.0  ;;  %v970_v24 = vmax.f32 %v892_v22, 0.0  ;;  %v969_v25 = vmax.f32 %v890_v60, 0.0 }
 0x206   : > { %1321 = vmatmul.msk.bf16.gmra.mxu2 %vm404_vm0, %v809_v26 }
 0x207   : > { %v754_v27 = vpop.f32.mrf.mxu1 }
 0x208   : > { %v755_v29 = vadd.f32 %v1692_v59, %v754_v27 }
 0x209   : > { %v914_v28 = vpop.f32.mrf.mxu2 }
 0x20a   : > { %v792_v33 = vmax.f32 %v755_v29, 0.0  ;;  %v915_v63 = vadd.f32 %v1783_v47, %v914_v28 }
 0x20c   : > { %v979_v3 = vmax.f32 %v915_v63, 0.0 }
 0x20f   : > { %v756_v30 = vpop.f32.mrf.mxu1 }
 0x210   : > { %v757_v31 = vadd.f32 %v1692_v59, %v756_v30 }
 0x211   : > { %v916_v32 = vpop.f32.mrf.mxu2 }
 0x212   : > { %v793_v34 = vmax.f32 %v757_v31, 0.0  ;;  %v917_v58 = vadd.f32 %v1783_v47, %v916_v32 }
 0x214   : > { %v810_v36 = vpack.c.bf16 %v793_v34, %v792_v33  ;;  %v980_v0 = vmax.f32 %v917_v58, 0.0 }
 0x216   : > { %1322 = vmatmul.msk.bf16.gmra.mxu2 %vm404_vm0, %v810_v36 }
 0x217   : > { %v759_v37 = vpop.f32.mrf.mxu1 }
 0x218   : > { %v760_v39 = vadd.f32 %v1692_v59, %v759_v37 }
 0x219   : > { %v919_v38 = vpop.f32.mrf.mxu2 }
 0x21a   : > { %v794_v42 = vmax.f32 %v760_v39, 0.0  ;;  %v920_v56 = vadd.f32 %v1783_v47, %v919_v38 }
 0x21c   : > { %v981_v61 = vmax.f32 %v920_v56, 0.0  ;;  %v1142_v56 = vld [vmem:[#allocation2] sm:$0x1] }
 0x21f   : > { %v761_v35 = vpop.f32.mrf.mxu1 }
 0x220   : > { %v762_v40 = vadd.f32 %v1692_v59, %v761_v35 }
 0x221   : > { %v921_v41 = vpop.f32.mrf.mxu2 }
 0x222   : > { %v795_v43 = vmax.f32 %v762_v40, 0.0  ;;  %v922_v59 = vadd.f32 %v1783_v47, %v921_v41 }
 0x224   : > { %v811_v44 = vpack.c.bf16 %v795_v43, %v794_v42  ;;  %v982_v57 = vmax.f32 %v922_v59, 0.0 }
 0x226   : > { %1323 = vmatmul.msk.bf16.gmra.mxu2 %vm404_vm0, %v811_v44 }
 0x229   : > { %v924_v45 = vpop.f32.mrf.mxu2 }
 0x22a   : > { %v925_v51 = vadd.f32 %v1783_v47, %v924_v45  ;;  %v1001_v45 = vld [vmem:[%s1916_s7] sm:$0xff] }
 0x22c   : > { %v983_v53 = vmax.f32 %v925_v51, 0.0 }
 0x231   : > { %v926_v48 = vpop.f32.mrf.mxu2 }
 0x232   : > { %v927_v49 = vadd.f32 %v1783_v47, %v926_v48 }
 0x234   : > { %v984_v52 = vmax.f32 %v927_v49, 0.0 }
 0x236   : > { %1324 = vmatpush.xpose.msk.msra.mxu3 %vm1002_vm2, %v984_v52 }
 0x239   : > { %v1789_v54 = vpop.f32.mrf.mxu2 }
 0x23a   : > { %1325 = vmatpush.xpose.msk.msra.mxu3 %vm1002_vm2, %v983_v53 }
 0x23e   : > { %1326 = vmatpush.xpose.msk.msra.mxu3 %vm1002_vm2, %v982_v57  ;;  %v1478_v57 = vmov 0  }
 0x23f   : > { %1410 = vset.pattern.permute.xlu0 %v1478_v57 }
 0x240   : > { %1145 = vperm.xlu0 %1410, %v1142_v56  }
 0x241   : > { %v1795_v62 = vpop.f32.mrf.mxu2 }
 0x242   : > { %1327 = vmatpush.xpose.msk.msra.mxu3 %vm1002_vm2, %v981_v61  ;;  %v932_v8 = vadd.f32 %v1783_v47, %v1795_v62 }
 0x244   : > { %v986_v12 = vmax.f32 %v932_v8, 0.0 }
 0x246   : > { %1328 = vmatpush.xpose.msk.msra.mxu3 %vm1002_vm2, %v980_v0 }
 0x249   : > { %v1801_v4 = vpop.f32.mrf.mxu2 }
 0x24a   : > { %1329 = vmatpush.xpose.msk.msra.mxu3 %vm1002_vm2, %v979_v3  ;;  %v935_v6 = vadd.f32 %v1783_v47, %v1801_v4 }
 0x24e   : > { %1330 = vmatpush.xpose.msk.msra.mxu3 %vm1002_vm2, %v978_v7 }
 0x251   : > { %v1808_v11 = vpop.f32.mrf.mxu2 }
 0x252   : > { %1331 = vmatpush.xpose.msk.msra.mxu3 %vm1002_vm2, %v977_v9  ;;  %v937_v2 = vadd.f32 %v1783_v47, %v1808_v11  ;;  %v987_v9 = vmax.f32 %v935_v6, 0.0  ;;  %v930_v11 = vadd.f32 %v1783_v47, %v1789_v54 }
 0x254   : > { %v988_v7 = vmax.f32 %v937_v2, 0.0 }
 0x256   : > { %1332 = vmatpush.xpose.msk.msra.mxu3 %vm1002_vm2, %v976_v13  ;;  %v985_v13 = vmax.f32 %v930_v11, 0.0 }
 0x259   : > { %v1816_v17 = vpop.f32.mrf.mxu2 }
 0x25a   : > { %1333 = vmatpush.xpose.msk.msra.mxu3 %vm1002_vm2, %v975_v16  ;;  %v940_v63 = vadd.f32 %v1783_v47, %v1816_v17  ;;  %v1157_v16 = vlaneseq }
 0x25c   : > { %v989_v3 = vmax.f32 %v940_v63, 0.0  ;;  %vm1159_vm4 = vcmp.lt.s32.totalorder %v1157_v16, 256 }
 0x25e   : > { %1334 = vmatpush.xpose.msk.msra.mxu3 %vm1002_vm2, %v974_v18 }
 0x261   : > { %v941_v20 = vpop.f32.mrf.mxu2 }
 0x262   : > { %1335 = vmatpush.xpose.msk.msra.mxu3 %vm1002_vm2, %v973_v19  ;;  %v942_v58 = vadd.f32 %v1783_v47, %v941_v20 }
 0x264   : > { %v990_v0 = vmax.f32 %v942_v58, 0.0 }
 0x266   : > { %1336 = vmatpush.xpose.msk.msra.mxu3 %vm1002_vm2, %v972_v21 }
 0x269   : > { %v944_v23 = vpop.f32.mrf.mxu2 }
 0x26a   : > { %1337 = vmatpush.xpose.msk.msra.mxu3 %vm1002_vm2, %v971_v1  ;;  %v945_v59 = vadd.f32 %v1783_v47, %v944_v23 }
 0x26c   : > { %v991_v61 = vmax.f32 %v945_v59, 0.0 }
 0x26e   : > { %1338 = vmatpush.xpose.msk.msra.mxu3 %vm1002_vm2, %v970_v24 }
 0x271   : > { %v946_v26 = vpop.f32.mrf.mxu2 }
 0x272   : > { %1339 = vmatpush.xpose.msk.msra.mxu3 %vm1002_vm2, %v969_v25  ;;  %v947_v51 = vadd.f32 %v1783_v47, %v946_v26 }
 0x274   : > { %v992_v53 = vmax.f32 %v947_v51, 0.0 }
 0x275   : > { %1340 = vmatmul.msk.f32.vlgmr.msra.gmra.mxu3 %vm1002_vm2, %v1001_v45 }
 0x279   : > { %v949_v55 = vpop.f32.mrf.mxu2 }
 0x27a   : > { %v950_v48 = vadd.f32 %v1783_v47, %v949_v55 }
 0x27c   : > { %v993_v52 = vmax.f32 %v950_v48, 0.0 }
 0x281   : > { %v951_v27 = vpop.f32.mrf.mxu2 }
 0x282   : > { %v952_v43 = vadd.f32 %v1783_v47, %v951_v27 }
 0x284   : > { %v994_v49 = vmax.f32 %v952_v43, 0.0 }
 0x289   : > { %v954_v28 = vpop.f32.mrf.mxu2 }
 0x28a   : > { %v955_v41 = vadd.f32 %v1783_v47, %v954_v28 }
 0x28c   : > { %v995_v44 = vmax.f32 %v955_v41, 0.0 }
 0x291   : > { %v956_v29 = vpop.f32.mrf.mxu2 }
 0x292   : > { %v957_v35 = vadd.f32 %v1783_v47, %v956_v29 }
 0x294   : > { %v996_v42 = vmax.f32 %v957_v35, 0.0 }
 0x299   : > { %v959_v30 = vpop.f32.mrf.mxu2 }
 0x29a   : > { %v960_v38 = vadd.f32 %v1783_v47, %v959_v30 }
 0x29c   : > { %v997_v40 = vmax.f32 %v960_v38, 0.0 }
 0x2a1   : > { %v961_v50 = vpop.f32.mrf.mxu2 }
 0x2a2   : > { %v962_v36 = vadd.f32 %v1783_v47, %v961_v50 }
 0x2a4   : > { %v998_v39 = vmax.f32 %v962_v36, 0.0 }
 0x2a9   : > { %v964_v31 = vpop.f32.mrf.mxu2 }
 0x2aa   : > { %v965_v34 = vadd.f32 %v1783_v47, %v964_v31 }
 0x2ac   : > { %v999_v37 = vmax.f32 %v965_v34, 0.0 }
 0x2b1   : > { %v966_v32 = vpop.f32.mrf.mxu2 }
 0x2b2   : > { %v967_v33 = vadd.f32 %v1783_v47, %v966_v32  ;;  %v1146_v15 = vpop.permute.xlu0 %1145 }
 0x2b3   : > { %v1148_v62 = vperm.slane %v1146_v15, 0 }
 0x2b4   : > { %v1000_v46 = vmax.f32 %v967_v33, 0.0 }
 0x2b6   : > { %1341 = vmatpush.xpose.msk.msrb.mxu3 %vm1002_vm2, %v1000_v46 }
 0x2ba   : > { %1342 = vmatpush.xpose.msk.msrb.mxu3 %vm1002_vm2, %v999_v37 }
 0x2be   : > { %1343 = vmatpush.xpose.msk.msrb.mxu3 %vm1002_vm2, %v998_v39 }
 0x2c2   : > { %1344 = vmatpush.xpose.msk.msrb.mxu3 %vm1002_vm2, %v997_v40 }
 0x2c6   : > { %1345 = vmatpush.xpose.msk.msrb.mxu3 %vm1002_vm2, %v996_v42 }
 0x2ca   : > { %1346 = vmatpush.xpose.msk.msrb.mxu3 %vm1002_vm2, %v995_v44 }
 0x2ce   : > { %1347 = vmatpush.xpose.msk.msrb.mxu3 %vm1002_vm2, %v994_v49 }
 0x2d2   : > { %1348 = vmatpush.xpose.msk.msrb.mxu3 %vm1002_vm2, %v993_v52 }
 0x2d6   : > { %1349 = vmatpush.xpose.msk.msrb.mxu3 %vm1002_vm2, %v992_v53 }
 0x2da   : > { %1350 = vmatpush.xpose.msk.msrb.mxu3 %vm1002_vm2, %v991_v61 }
 0x2de   : > { %1351 = vmatpush.xpose.msk.msrb.mxu3 %vm1002_vm2, %v990_v0 }
 0x2e2   : > { %1352 = vmatpush.xpose.msk.msrb.mxu3 %vm1002_vm2, %v989_v3 }
 0x2e6   : > { %1353 = vmatpush.xpose.msk.msrb.mxu3 %vm1002_vm2, %v988_v7 }
 0x2ea   : > { %1354 = vmatpush.xpose.msk.msrb.mxu3 %vm1002_vm2, %v987_v9 }
 0x2ee   : > { %1355 = vmatpush.xpose.msk.msrb.mxu3 %vm1002_vm2, %v986_v12 }
 0x2f2   : > { %1356 = vmatpush.xpose.msk.msrb.mxu3 %vm1002_vm2, %v985_v13 }
 0x2f5   : > { %1357 = vmatmul.msk.f32.vlgmr.msrb.gmra.mxu3 %vm1002_vm2, %v1001_v45 }
 0x2f8   : > { %v1119_v4 = vpop.f32.mrf.mxu3 }
 0x2f9   : > { %v1149_v17 = vadd.f32 %v1148_v62, %v1119_v4 }
 0x378   : > { %v1139_v47 = vpop.f32.mrf.mxu3 }
 0x379   : > { %v1150_v54 = vadd.f32 %v1148_v62, %v1139_v47 }
 0x37b   : > { %v1153_v14 = vrot.slane %v1150_v54, 7 }
 0x37d   : > { %v1155_v18 = vsel %vm1154_vm3, %v1149_v17, %v1153_v14 }
 0x37e   : > { %1161 = vst.msk [vmem:[%s328_s15] sm:$0x3] %vm1159_vm4, %v1155_v18 }
 0x37f   : > { %1441 = shalt.err (!%p1438_p3)
}
 0x380   : > { %1370 = dma.vmem_to_hbm [thread:$0]  (%p1570_p5), %s1176_s30, 32, %s1178_s17, %s1163_s8  }
 0x381 PF: > { %p1376_p4 = scmp.ge.s32.totalorder %s1476_s14, 2  ;;  %s1189_s25 = sand.u32 1, %s1464_s11  }
 0x382   : > { %s1190_s29 = scalar_lea.sflag [#allocation4], %s1189_s25 }
 0x383   : > { %p1373_p7 = pnand %p1376_p4, %p1574_p6 }
 0x385   : > { %p1374_p8 = pneg %p1373_p7 }
 0x387   : > { %1459 = dma.done.wait (%p1374_p8), %s1190_s29, 32  }
 0x388   : > { %1461 = vsyncadd (%p1374_p8), %s1190_s29, 4294967264  ;;  %p21_p9 = scmp.ge.s32.totalorder %s1557_s16, 4   ;;  %s1921_s11 = smov %s1468_s12 }
 0x389   : > { %s1922_s12 = smov %s1472_s13  ;;  %s1923_s13 = smov %s1568_s19 }
 0x38a   : > { %s1924_s14 = smov %s1557_s16  ;;  %23 = sbr.rel (!%p21_p9) target bundleno = 6 (0x6), region = 91 }
 0x38f   :  { %1196 = vsyncpa [#allocation4], 1 }
 0x390   :  { %1198 = vsyncpa [#allocation4 + $0x1], 1 }

</bundles_post_ra>
